<compile_context>
chip_gen: v7x
topology: tpu7x:2x2x1
jax: 0.10.0
libtpu: 0.0.40
codegen_flags: <defaults>
</compile_context>

<pallas_src>
import functools

import jax
import jax.numpy as jnp
from jax.experimental import pallas as pl
from jax.experimental.pallas import tpu as pltpu

_LANE = 128
_NEG_FILL = -1e30  # acts as -inf for softmax; representable in bf16 and f32


def _round_up(x, m):
    return (x + m - 1) // m * m


def _vmem_limit_bytes():
    """Scoped VMEM limit for this chip (per-TensorCore, with headroom)."""
    phys = 64 * 1024 * 1024                      # conservative default (v7x)
    try:
        info = pltpu.get_tpu_info()
        phys = int(getattr(info, "vmem_capacity_bytes", phys))
    except Exception:
        pass
    try:
        kind = jax.devices()[0].device_kind.lower()
        if "7" in kind:                          # v7x: 64 MiB per TensorCore even
            phys = min(phys, 64 * 1024 * 1024)   # if the query reports per-chip
    except Exception:
        pass
    # ~56 MiB on v7x, ~112 MiB on v5e/v6e.
    return min((phys * 7) // 8, 112 * 1024 * 1024)


# ---------------------------------------------------------------------------
# Kernels
# ---------------------------------------------------------------------------
def _softmax_rows_kernel(x_ref, o_ref, *, log_probs: bool):
    """Single pass: each block is (tm, full vocab)."""
    x = x_ref[...].astype(jnp.float32)            # the `.float()` cast
    m = jnp.max(x, axis=-1, keepdims=True)
    denom = jnp.sum(jnp.exp(x - m), axis=-1, keepdims=True)
    if log_probs:
        o_ref[...] = (x - (m + jnp.log(denom))).astype(o_ref.dtype)
    else:
        o_ref[...] = (jnp.exp(x - m)
                      * pl.reciprocal(denom, approx=False)).astype(o_ref.dtype)


def _softmax_vocab_tiled_kernel(x_ref, o_ref, m_ref, l_ref, *,
                                log_probs: bool, vocab: int, tv: int):
    """Two passes over vocab tiles: pass 0 = online max/sum-exp, pass 1 = write."""
    p = pl.program_id(1)   # 0: accumulate statistics, 1: write output
    k = pl.program_id(2)   # vocab tile index

    @pl.when((p == 0) & (k == 0))
    def _init():
        m_ref[...] = jnp.full_like(m_ref, -jnp.inf)
        l_ref[...] = jnp.zeros_like(l_ref)

    x = x_ref[...].astype(jnp.float32)            # the `.float()` cast
    # Mask the tail lane tile (columns >= vocab) so it vanishes from max/sum.
    col = k * tv + jax.lax.broadcasted_iota(jnp.int32, x.shape, 1)
    x = jnp.where(col < vocab, x, _NEG_FILL)

    @pl.when(p == 0)
    def _accumulate():
        m_prev = m_ref[...]
        m_new = jnp.maximum(m_prev, jnp.max(x, axis=-1, keepdims=True))
        l_ref[...] = (l_ref[...] * jnp.exp(m_prev - m_new)
                      + jnp.sum(jnp.exp(x - m_new), axis=-1, keepdims=True))
        m_ref[...] = m_new

    @pl.when(p == 1)
    def _finalize():
        # Output block (i, 0) stays resident (un-written) through all of pass 0
        # and is only written at pass-1 k=0; it is never flushed in between
        # because its block index does not change until pass-1 k=1.
        shifted = x - m_ref[...]
        if log_probs:
            o_ref[...] = (shifted - jnp.log(l_ref[...])).astype(o_ref.dtype)
        else:
            o_ref[...] = (jnp.exp(shifted)
                          * pl.reciprocal(l_ref[...], approx=False)
                          ).astype(o_ref.dtype)


# ---------------------------------------------------------------------------
# Wrapper
# ---------------------------------------------------------------------------
def normalized_probs_pallas(logits, log_probs, *, out_dtype=jnp.float32,
                            force_vocab_tiled=False, vocab_tile=None):
    """(log_)softmax over the last axis of (..., vocab) logits."""
    orig_shape = logits.shape
    v = int(orig_shape[-1])
    rows = 1
    for d in orig_shape[:-1]:
        rows *= int(d)
    flat = logits.reshape(rows, v)                 # keep native dtype (bf16/f32)

    in_bytes = flat.dtype.itemsize
    out_bytes = jnp.dtype(out_dtype).itemsize
    sub = max(8, 32 // max(1, in_bytes))           # 8 f32 / 16 bf16 / 32 int8
    v_lanes = _round_up(v, _LANE)                  # VMEM lane footprint of a row

    vmem_limit = _vmem_limit_bytes()
    budget = (vmem_limit * 9) // 10

    # Per block-row bytes: 2x double-buffered input + 2x double-buffered output
    # + ~2 live (tm, v) f32 intermediates inside the kernel body.
    per_row = v_lanes * (2 * in_bytes + 2 * out_bytes + 2 * 4)
    tm_vmem = (budget // per_row) // sub * sub

    use_tiled = force_vocab_tiled or tm_vmem < sub

    if not use_tiled:
        # -------- Single pass over the full vocab per block. --------
        tm_grid = _round_up(pl.cdiv(rows, 8), sub)     # aim for ~8 grid steps
        tm = min(tm_vmem, 1024, tm_grid)
        if tm >= rows:
            tm = rows                                  # full-extent row block
        grid_rows = pl.cdiv(rows, tm)

        kernel = functools.partial(_softmax_rows_kernel, log_probs=log_probs)
        out = pl.pallas_call(
            kernel,
            out_shape=jax.ShapeDtypeStruct((rows, v), out_dtype),
            grid_spec=pltpu.PrefetchScalarGridSpec(
                num_scalar_prefetch=0,
                grid=(grid_rows,),
                in_specs=[pl.BlockSpec((tm, v), lambda i: (i, 0))],
                out_specs=pl.BlockSpec((tm, v), lambda i: (i, 0)),
            ),
            compiler_params=pltpu.CompilerParams(
                dimension_semantics=("parallel",),
                vmem_limit_bytes=int(vmem_limit),
            ),
            cost_estimate=pl.CostEstimate(
                flops=5 * rows * v,
                transcendentals=rows * v,
                bytes_accessed=rows * v * (in_bytes + out_bytes),
            ),
        )(flat)
    else:
        # -------- Two-pass vocab-tiled online softmax (huge vocab). --------
        tm = min(8 * sub, 1024)                        # modest rows; grow tv
        if tm >= rows:
            tm = rows
        if vocab_tile is not None:
            tv = _round_up(max(int(vocab_tile), _LANE), _LANE)
        else:
            # 3x buffered input + 2x buffered output + ~2 f32 intermediates.
            per_col = tm * (3 * in_bytes + 2 * out_bytes + 2 * 4)
            tv = max(_LANE, (budget // per_col) // _LANE * _LANE)
        tv = min(tv, v_lanes)
        nk = pl.cdiv(v, tv)
        grid_rows = pl.cdiv(rows, tm)

        kernel = functools.partial(_softmax_vocab_tiled_kernel,
                                   log_probs=log_probs, vocab=v, tv=tv)
        out = pl.pallas_call(
            kernel,
            out_shape=jax.ShapeDtypeStruct((rows, v), out_dtype),
            grid_spec=pltpu.PrefetchScalarGridSpec(
                num_scalar_prefetch=0,
                grid=(grid_rows, 2, nk),
                in_specs=[pl.BlockSpec((tm, tv), lambda i, p, k: (i, k),
                                       pipeline_mode=pl.Buffered(3))],
                # Pass 0 parks the output on block (i, 0) (never written);
                # pass 1 walks (i, k) and writes each block exactly once.
                out_specs=pl.BlockSpec((tm, tv), lambda i, p, k: (i, p * k)),
                scratch_shapes=[pltpu.VMEM((tm, 1), jnp.float32),
                                pltpu.VMEM((tm, 1), jnp.float32)],
            ),
            compiler_params=pltpu.CompilerParams(
                dimension_semantics=("parallel", "arbitrary", "arbitrary"),
                vmem_limit_bytes=int(vmem_limit),
            ),
            cost_estimate=pl.CostEstimate(
                flops=8 * rows * v,
                transcendentals=2 * rows * v,
                bytes_accessed=rows * v * (2 * in_bytes + out_bytes),
            ),
        )(flat)

    return out.reshape(orig_shape)


# ---------------------------------------------------------------------------
# Module port
# ---------------------------------------------------------------------------
class FairseqDecoder:
    """JAX/Pallas port of fairseq's FairseqDecoder base class."""

    def __init__(self, dictionary):
        self.dictionary = dictionary
        self.adaptive_softmax = None  # base class never builds one

    def forward(self, prev_output_tokens, encoder_out):
        # TODO(synk): abstract in the PyTorch base class (raises
        # NotImplementedError); nothing to lower to Pallas here.
        raise NotImplementedError

    def get_normalized_probs(self, net_output, log_probs, sample=None):
        """Get normalized probabilities (or log probs) from a net's output."""
        if getattr(self, "adaptive_softmax", None) is not None:
            # TODO(synk): adaptive_softmax is never present on the base class;
            # not translated.
            raise NotImplementedError("adaptive_softmax is not supported")
        logits = net_output[0]
        return normalized_probs_pallas(logits, log_probs)

    def max_positions(self):
        """Maximum input length supported by the decoder."""
        return 1000000.0

    def upgrade_state_dict(self, state_dict):
        return state_dict


if __name__ == "__main__":
    key = jax.random.PRNGKey(0)
    k_logits, k_attn, k_odd, k_big = jax.random.split(key, 4)

    # Small, deterministic example consistent with the module's contract.
    batch, tgt_len, vocab, src_len = 2, 8, 32, 8
    logits = jax.random.normal(k_logits, (batch, tgt_len, vocab), dtype=jnp.float32)
    attn = jax.random.uniform(k_attn, (batch, tgt_len, src_len), dtype=jnp.float32)
    net_output = (logits, attn)  # (decoder output, attention weights)

    decoder = FairseqDecoder(dictionary=list(range(vocab)))

    log_p = decoder.get_normalized_probs(net_output, log_probs=True, sample=None)
    probs = decoder.get_normalized_probs(net_output, log_probs=False, sample=None)
    jax.block_until_ready((log_p, probs))

    ref_log = jax.nn.log_softmax(logits.astype(jnp.float32), axis=-1)
    ref_p = jax.nn.softmax(logits.astype(jnp.float32), axis=-1)
    assert log_p.shape == (batch, tgt_len, vocab) and log_p.dtype == jnp.float32
    assert probs.shape == (batch, tgt_len, vocab) and probs.dtype == jnp.float32
    assert jnp.allclose(log_p, ref_log, atol=1e-5, rtol=1e-5)
    assert jnp.allclose(probs, ref_p, atol=1e-5, rtol=1e-5)

    # bf16 logits stay bf16 on the HBM read path; f32 cast happens in-kernel.
    logits_bf16 = logits.astype(jnp.bfloat16)
    log_p_bf16 = decoder.get_normalized_probs((logits_bf16, attn),
                                              log_probs=True, sample=None)
    jax.block_until_ready(log_p_bf16)
    ref_log_bf16 = jax.nn.log_softmax(logits_bf16.astype(jnp.float32), axis=-1)
    assert log_p_bf16.dtype == jnp.float32
    assert jnp.allclose(log_p_bf16, ref_log_bf16, atol=1e-5, rtol=1e-5)

    # Non-multiple-of-8 row count and non-128-multiple vocab: exercises the
    # partial last row block and masked lane stores (no wrapper pad/slice).
    logits_odd = jax.random.normal(k_odd, (3, 11, 160), dtype=jnp.float32)
    log_p_odd = normalized_probs_pallas(logits_odd, True)
    jax.block_until_ready(log_p_odd)
    assert jnp.allclose(log_p_odd, jax.nn.log_softmax(logits_odd, axis=-1),
                        atol=1e-5, rtol=1e-5)

    # Exercise the two-pass vocab-tiled path (used automatically for very large
    # vocabularies) by forcing a small vocab tile; vocab=500 also exercises the
    # in-kernel tail-lane masking.
    b2, t2, v2 = 2, 12, 500
    logits_big = jax.random.normal(k_big, (b2, t2, v2), dtype=jnp.float32)
    log_p_t = normalized_probs_pallas(logits_big, True,
                                      force_vocab_tiled=True, vocab_tile=128)
    p_t = normalized_probs_pallas(logits_big, False,
                                  force_vocab_tiled=True, vocab_tile=128)
    jax.block_until_ready((log_p_t, p_t))
    assert jnp.allclose(log_p_t, jax.nn.log_softmax(logits_big, axis=-1),
                        atol=2e-5, rtol=2e-5)
    assert jnp.allclose(p_t, jax.nn.softmax(logits_big, axis=-1),
                        atol=2e-5, rtol=2e-5)

    print("KERNEL_OK")
</pallas_src>

<mosaic_0001>
module attributes {stable_mosaic.version = 11 : i64} {
  func.func @_softmax_rows_kernel(%arg0: i32, %arg1: memref<8x32xf32, #tpu.memory_space<vmem>>, %arg2: memref<8x32xf32, #tpu.memory_space<vmem>>) attributes {dimension_semantics = [#tpu.dimension_semantics<parallel>], iteration_bounds = array<i64: 2>, scalar_prefetch = 0 : i64, scratch_operands = 0 : i64, tpu.core_type = #tpu.core_type<tc>, window_params = [{transform_indices = @transform_0, window_bounds = array<i64: 8, 32>}, {transform_indices = @transform_1, window_bounds = array<i64: 8, 32>}]} {
    %c0 = arith.constant 0 : index
    %c0_0 = arith.constant 0 : index
    %0 = vector.load %arg1[%c0, %c0_0] : memref<8x32xf32, #tpu.memory_space<vmem>>, vector<8x32xf32>
    %cst = arith.constant dense<0xFF800000> : vector<8xf32>
    %1 = vector.multi_reduction <maximumf>, %0, %cst [1] : vector<8x32xf32> to vector<8xf32>
    %2 = vector.shape_cast %1 : vector<8xf32> to vector<8x1xf32>
    %3 = vector.broadcast %2 : vector<8x1xf32> to vector<8x32xf32>
    %4 = arith.subf %0, %3 : vector<8x32xf32>
    %5 = math.exp %4 : vector<8x32xf32>
    %cst_1 = arith.constant dense<0.000000e+00> : vector<8xf32>
    %6 = vector.multi_reduction <add>, %5, %cst_1 [1] : vector<8x32xf32> to vector<8xf32>
    %7 = vector.shape_cast %6 : vector<8xf32> to vector<8x1xf32>
    %8 = math.log %7 : vector<8x1xf32>
    %9 = arith.addf %2, %8 : vector<8x1xf32>
    %10 = vector.broadcast %9 : vector<8x1xf32> to vector<8x32xf32>
    %11 = arith.subf %0, %10 : vector<8x32xf32>
    %c0_2 = arith.constant 0 : index
    %c0_3 = arith.constant 0 : index
    %12 = vector.load %arg2[%c0_2, %c0_3] : memref<8x32xf32, #tpu.memory_space<vmem>>, vector<8x32xf32>
    tpu.vector_store %arg2[%c0_2, %c0_3], %11 {strides = array<i32>} : memref<8x32xf32, #tpu.memory_space<vmem>>, vector<8x32xf32>,
    return
  }
  func.func @transform_0(%arg0: i32) -> (i32, i32) {
    %c0_i32 = arith.constant 0 : i32
    %c0_i32_0 = arith.constant 0 : i32
    return %arg0, %c0_i32 : i32, i32
  }
  func.func @transform_1(%arg0: i32) -> (i32, i32) {
    %c0_i32 = arith.constant 0 : i32
    %c0_i32_0 = arith.constant 0 : i32
    return %arg0, %c0_i32 : i32, i32
  }
}

</mosaic_0001>

<bundles_post_ra>
// kernel: tpu_custom_call.1
= control target key start
LH: loop header
LB: loop body
LE: loop exit
PB: predicated region body
PF: predicated region fallthrough
CT: control target
= control target key end

     0   :  { %6 = vsyncpa [#allocation3], 0  ;;  %s568_s0 = inlined_call_operand.hbm [shape: f32[16,32], index: 0, kind: input, shape index: {}]   ;;  %s569_s1 = inlined_call_operand.hbm [shape: f32[16,32], index: 1, kind: output, shape index: {}]  }
   0x1   :  { %8 = vsyncpa [#allocation3 + $0x1], 0 }
   0x2   :  { %9 = vsyncpa [#allocation4], 0 }
   0x3   :  { %11 = vsyncpa [#allocation4 + $0x1], 0  ;;  %s404_s6 = smov 0   ;;  %s406_s7 = smov 0  }
   0x4   :  { %s408_s8 = smov 0   ;;  %s410_s9 = smov 0  }
   0x5 LB: > { %s425_s10 = sadd.s32 4294967295, %s390_s9   ;;  %s232_s11 = sadd.s32 4294967294, %s390_s9   ;;  %s390_s9 = sphi %s410_s9, %s584_s9   ;;  %s386_s8 = sphi %s408_s8, %s583_s8   ;;  %s382_s7 = sphi %s406_s7, %s582_s7   ;;  %s378_s6 = sphi %s404_s6, %s581_s6  }
   0x6   : > { %s429_s12 = sadd.s32 1, %s390_s9   ;;  %s24_s13 = sadd.s32 1, %s386_s8 }
   0x7   : > { %s21_s14 = ssub.s32 %s390_s9, %s429_s12  ;;  %p31_p0 = scmp.ne.s32.totalorder %s386_s8, %s382_s7 }
   0x8   : > { %p22_p1 = scmp.eq.s32.totalorder %s21_s14, 0  ;;  %p32_p2 = scmp.eq.s32.totalorder %s390_s9, 0 }
   0x9   : > { %p37_p3 = scmp.ne.s32.totalorder %s382_s7, %s378_s6  ;;  %p38_p4 = scmp.eq.s32.totalorder %s425_s10, 0 }
   0xa   : > { %s441_s15 = scalar_select %p22_p1, %s386_s8, %s24_s13  }
   0xb   : > { %p443_p5 = por %p32_p2, %p31_p0  ;;  %p447_p6 = por %p38_p4, %p37_p3 }
   0xc   : > { %p61_p7 = scmp.eq.s32.totalorder %s425_s10, 1  ;;  %p67_p8 = scmp.eq.s32.totalorder %s232_s11, 1 }
   0xd   : > { %p256_p10 = scmp.lt.s32.totalorder %s390_s9, 2  ;;  %s87_s20 = sand.u32 1, %s386_s8  }
   0xe   : > { %p454_p11 = por %p61_p7, %p31_p0  ;;  %p458_p12 = por %p67_p8, %p37_p3 }
   0xf   : > { %s236_s21 = sshll.u32 %s390_s9, 7  ;;  %s235_s22 = sshll.u32 %s87_s20, 3 }
  0x10   : > { %s573_s18 = scalar_select %p454_p11, 1, 0 }
  0x11   : > { %s574_s19 = scalar_select %p458_p12, 1, 0 }
  0x12   : > { %s467_s25 = scalar_lea.hbm %s568_s0, %s236_s21  ;;  %s91_s26 = scalar_lea.vmem [#allocation2], %s235_s22 }
  0x13   : > { %s98_s27 = sshll.u32 %s91_s26, 4  ;;  %p471_p13 = pnand %p256_p10, %p443_p5  ;;  %s475_s27 = int_to_ptr.vmem [resolvable:$true] %s98_s27 }
  0x14   : > { %s88_s29 = scalar_lea.sflag [#allocation3], %s87_s20  ;;  %s294_s30 = scalar_lea.hbm %s467_s25, 128 }
  0x15   : > { %p295_p2 = scmp.ne.s32.totalorder %s467_s25, %s294_s30  ;;  %p296_p3 = pneg %p471_p13 }
  0x16   : > { %s299_s4 = scalar_lea.hbm %s568_s0, 256  ;;  %p300_p5 = scmp.lt.u32.totalorder %s467_s25, %s568_s0 }
  0x17   : > { %p297_p4 = pnand %p296_p3, %p295_p2  ;;  %p301_p8 = scmp.lt.u32.totalorder %s299_s4, %s294_s30 }
  0x18   : > { %p303_p9 = scmp.lt.u32.totalorder %s294_s30, %s467_s25 }
  0x19   : > { %p298_p7 = pneg %p297_p4  ;;  %p302_p10 = por %p301_p8, %p300_p5 }
  0x1b   : > { %p304_p0 = por %p303_p9, %p302_p10 }
  0x1d   : > { %p305_p1 = pnand %p304_p0, %p298_p7 }
  0x1f   : > { %308 = shalt.err (!%p305_p1)
}
  0x20   : > { %s309_s13 = scalar_lea.vmem %s475_s27, 128  ;;  %s392_s14 = smov [#allocation2]  }
  0x21   : > { %p310_p2 = scmp.ne.s32.totalorder %s475_s27, %s309_s13  ;;  %s314_s16 = sshll.u32 %s392_s14, 4  ;;  %s315_s16 = int_to_ptr.vmem [resolvable:$false] %s314_s16 }
  0x22   : > { %s316_s20 = scalar_lea.vmem %s315_s16, 256  ;;  %p317_p11 = scmp.lt.s32.totalorder %s475_s27, %s315_s16 }
  0x23   : > { %p312_p4 = pnand %p310_p2, %p296_p3  ;;  %p318_p5 = scmp.lt.s32.totalorder %s316_s20, %s309_s13 }
  0x25   : > { %p313_p12 = pneg %p312_p4  ;;  %p319_p8 = por %p318_p5, %p317_p11 }
  0x27   : > { %p320_p9 = pnand %p319_p8, %p313_p12 }
  0x29   : > { %323 = shalt.err (!%p320_p9)
}
  0x2a   : > { %251 = dma.hbm_to_vmem [thread:$0]  (!%p471_p13), %s467_s25, 128, %s475_s27, %s88_s29  }
  0x2b   : > { %p576_p0 = scmp.lt.s32.totalorder %s390_s9, 3  ;;  %p577_p1 = scmp.ge.s32.totalorder %s390_s9, 1 }
  0x2d   : > { %p104_p3 = pnand %p577_p1, %p576_p0 }
  0x2e   : > { %s509_s21 = sand.u32 (!%p104_p3), 1, %s382_s7  }
  0x2f   : > { %107 = sbr.rel (%p104_p3) target bundleno = 388 (0x184), region = 24  ;;  %s238_s22 = sshll.u32 (!%p104_p3), %s509_s21, 3 }
  0x30   : > { %s110_s23 = scalar_lea.sflag (!%p104_p3), [#allocation3], %s509_s21  ;;  %s113_s24 = scalar_lea.vmem (!%p104_p3), [#allocation2], %s238_s22 }
  0x36   : > { %369 = dma.done.wait (%p447_p6), %s110_s23, 128  }
  0x37   : > { %371 = vsyncadd (%p447_p6), %s110_s23, 4294967168  ;;  %vm133_vm0 = vcmask 261120   ;;  %v132_v0 = vld [vmem:[%s113_s24] sm:$0xff]  ;;  %s241_s17 = sshll.u32 %s425_s10, 7  ;;  %s131_s25 = scalar_lea.vmem [#allocation5], %s238_s22 }
  0x38   : > { %v134_v1 = vsel %vm133_vm0, %v132_v0, -inf  ;;  %s162_s26 = sshll.u32 %s131_s25, 4  ;;  %s523_s29 = scalar_lea.hbm %s569_s1, %s241_s17  ;;  %s525_s26 = int_to_ptr.vmem [resolvable:$true] %s162_s26 }
  0x39   : > { %135 = vmax.xlane.f32.xlu0 %v134_v1  ;;  %s149_s30 = scalar_lea.sflag [#allocation4], %s509_s21  ;;  %s324_s2 = scalar_lea.vmem %s525_s26, 128 }
  0x3a   : > { %p325_p6 = scmp.ne.s32.totalorder %s525_s26, %s324_s2  ;;  %p578_p11 = scmp.ne.s32.totalorder %s573_s18, 0 }
  0x3b   : > { %s393_s10 = smov [#allocation5]  }
  0x3c   : > { %p326_p12 = pnand %p325_p6, %p578_p11  ;;  %s328_s3 = sshll.u32 %s393_s10, 4  ;;  %s329_s3 = int_to_ptr.vmem [resolvable:$false] %s328_s3 }
  0x3d   : > { %s330_s4 = scalar_lea.vmem %s329_s3, 256  ;;  %p331_p7 = scmp.lt.s32.totalorder %s525_s26, %s329_s3 }
  0x3e   : > { %p327_p13 = pneg %p326_p12  ;;  %p332_p10 = scmp.lt.s32.totalorder %s330_s4, %s324_s2 }
  0x40   : > { %p333_p2 = por %p332_p10, %p331_p7 }
  0x42   : > { %p334_p4 = pnand %p333_p2, %p327_p13 }
  0xc6   : > { %v136_v2 = vpop.xlane.xlu0 %135 }
  0xc7   : > { %v137_v3 = vsub.f32 %v132_v0, %v136_v2 }
  0xc9   : > { %v138_v4 = vmul.f32 1.442695, %v137_v3 }
  0xcb   : > { %290 = vpow2.f32 %v138_v4 }
  0xd5   : > { %v291_v5 = vpop.eup %290 }
  0xd6   : > { %v140_v6 = vsel %vm133_vm0, %v291_v5, 0.0 }
  0xd7   : > { %141 = vadd.xlane.f32.xlu0 %v140_v6 }
 0x164   : > { %v142_v7 = vpop.xlane.xlu0 %141 }
 0x165   : > { %292 = vlog2.f32 %v142_v7 }
 0x16f   : > { %v293_v8 = vpop.eup %292 }
 0x170   : > { %v144_v9 = vmul.f32 0.6931472, %v293_v8 }
 0x172   : > { %v145_v10 = vadd.f32 %v144_v9, %v136_v2 }
 0x174   : > { %v146_v11 = vsub.f32 %v132_v0, %v145_v10 }
 0x176   : > { %147 = vst.msk [vmem:[%s131_s25] sm:$0xff] %vm133_vm0, %v146_v11 }
 0x177   : > { %337 = shalt.err (!%p334_p4)
}
 0x178   : > { %s338_s5 = scalar_lea.hbm %s523_s29, 128  ;;  %s342_s14 = scalar_lea.hbm %s569_s1, 256 }
 0x179   : > { %p339_p5 = scmp.ne.s32.totalorder %s523_s29, %s338_s5  ;;  %p343_p0 = scmp.lt.u32.totalorder %s523_s29, %s569_s1 }
 0x17a   : > { %p344_p1 = scmp.lt.u32.totalorder %s342_s14, %s338_s5  ;;  %p346_p6 = scmp.lt.u32.totalorder %s338_s5, %s523_s29 }
 0x17b   : > { %p340_p8 = pnand %p339_p5, %p578_p11 }
 0x17c   : > { %p345_p3 = por %p344_p1, %p343_p0 }
 0x17d   : > { %p341_p9 = pneg %p340_p8 }
 0x17e   : > { %p347_p12 = por %p346_p6, %p345_p3 }
 0x180   : > { %p348_p13 = pnand %p347_p12, %p341_p9 }
 0x182   : > { %351 = shalt.err (!%p348_p13)
}
 0x183   : > { %246 = dma.vmem_to_hbm [thread:$0]  (%p578_p11), %s525_s26, 128, %s523_s29, %s149_s30  }
 0x184 PF: > { %s174_s21 = sand.u32 1, %s378_s6   ;;  %p579_p7 = scmp.ne.s32.totalorder %s574_s19, 0 }
 0x185   : > { %p580_p10 = scmp.ge.s32.totalorder %s390_s9, 2  ;;  %s175_s22 = scalar_lea.sflag [#allocation4], %s174_s21 }
 0x187   : > { %p253_p2 = pnand %p580_p10, %p579_p7 }
 0x189   : > { %373 = dma.done.wait (!%p253_p2), %s175_s22, 128  }
 0x18a   : > { %375 = vsyncadd (!%p253_p2), %s175_s22, 4294967168  ;;  %p14_p4 = scmp.ge.s32.totalorder %s429_s12, 4   ;;  %s581_s6 = smov %s382_s7 }
 0x18b   : > { %s582_s7 = smov %s386_s8  ;;  %s583_s8 = smov %s441_s15 }
 0x18c   : > { %s584_s9 = smov %s429_s12  ;;  %16 = sbr.rel (!%p14_p4) target bundleno = 5 (0x5), region = 69 }
 0x193   :  { %180 = vsyncpa [#allocation3], 1 }
 0x194   :  { %182 = vsyncpa [#allocation3 + $0x1], 1 }
 0x195   :  { %183 = vsyncpa [#allocation4], 1 }
 0x196   :  { %185 = vsyncpa [#allocation4 + $0x1], 1 }

</bundles_post_ra>
